<compile_context>
chip_gen: v5e
topology: v5e:2x2
jax: 0.10.0
libtpu: 0.0.40
codegen_flags: <defaults>
</compile_context>

<pallas_src>
import jax
import jax.numpy as jnp
from jax.experimental import pallas as pl
from jax.experimental.pallas import tpu as pltpu

MAT_DIFF_LOSS_SCALE = 0.001
_MAX_BATCH_TILE = 256   # upper cap; actual tile is VMEM-budget derived
_CHUNK = 8              # rows of trans_feat per gram evaluation inside the kernel
_LANE = 128
_SUBLANE = 8


def _round_up(x, m):
    return ((x + m - 1) // m) * m


def _pick_tile_and_vmem(batch, num_classes, k):
    """VMEM-budget-aware batch tile + explicit scoped-VMEM limit."""
    # Per-row bytes of the pipelined (double-buffered) input blocks, lane-padded (f32/i32 = 4B).
    trans_row = k * _round_up(k, _LANE) * 4          # (K, K) row, minor dim pads to 128 lanes
    pred_row = _round_up(num_classes, _LANE) * 4     # (C,)  row
    tgt_row = _LANE * 4                              # (1,)  i32 row
    row_bytes = 2 * (trans_row + pred_row + tgt_row)  # x2: double-buffered pipeline

    budget = 24 << 20  # input-buffer budget; safe inside every generation's scoped VMEM
    tile = min(_MAX_BATCH_TILE, max(_SUBLANE, budget // row_bytes))
    tile = max(_SUBLANE, (tile // _SUBLANE) * _SUBLANE)
    tile_b = batch if batch <= tile else tile

    # Chunked gram temporaries (gram, diff, squares, partial reduces) + slack.
    chunk_tmp = 4 * _CHUNK * k * _round_up(k, _LANE) * 4
    est = row_bytes * max(tile_b, _SUBLANE) + chunk_tmp + (1 << 20)
    vmem_limit = int(min(max(est * 3 // 2, 16 << 20), 48 << 20))
    return tile_b, vmem_limit


def _make_kernel(*, batch, num_classes, k, tile_b, scale, needs_mask):
    inv_b = 1.0 / float(batch)
    n_full = tile_b // _CHUNK
    rem = tile_b - n_full * _CHUNK

    def kernel(pred_ref, target_ref, trans_ref, out_ref):
        step = pl.program_id(0)

        # --- init the resident (1,1) accumulator (same output block every step) ---
        @pl.when(step == 0)
        def _():
            out_ref[...] = jnp.zeros_like(out_ref)

        pred = pred_ref[...]      # (tile_b, C)    f32 log-probs
        target = target_ref[...]  # (tile_b, 1)    i32

        # ---- NLL: -pred[i, target[i]] via compare + select + lane reduce ----
        class_ids = jax.lax.broadcasted_iota(jnp.int32, (tile_b, num_classes), 1)
        picked = jnp.sum(jnp.where(class_ids == target, pred, 0.0),
                         axis=1, keepdims=True)                          # (tile_b, 1)
        if needs_mask:  # ragged last tile: select (not multiply) so garbage can't leak
            rows = (step * tile_b
                    + jax.lax.broadcasted_iota(jnp.int32, (tile_b, 1), 0))
            picked = jnp.where(rows < batch, picked, 0.0)
        nll_sum = jnp.sum(picked, keepdims=True)                         # (1, 1)

        # ---- regularizer: sum_b || A_b A_b^T - I ||_F  (chunked over batch rows) ----
        ii = jax.lax.broadcasted_iota(jnp.int32, (k, k), 0)
        jj = jax.lax.broadcasted_iota(jnp.int32, (k, k), 1)
        eye = (ii == jj).astype(jnp.float32)                             # hoisted once

        def fro_masked_sum(a, row_start):
            # a: (m, K, K) -> (1, 1) sum of (masked) Frobenius norms of A A^T - I
            m = a.shape[0]
            gram = jnp.einsum('bij,bkj->bik', a, a,
                              preferred_element_type=jnp.float32)        # (m, K, K)
            diff = gram - eye
            fro2 = jnp.sum(jnp.sum(diff * diff, axis=2),
                           axis=1, keepdims=True)                        # (m, 1)
            fro = jnp.sqrt(fro2)
            if needs_mask:
                rows = (step * tile_b + row_start
                        + jax.lax.broadcasted_iota(jnp.int32, (m, 1), 0))
                fro = jnp.where(rows < batch, fro, 0.0)
            return jnp.sum(fro, keepdims=True)                           # (1, 1)

        if n_full >= 2:
            def body(c, acc):
                start = pl.multiple_of(c * _CHUNK, _CHUNK)
                return acc + fro_masked_sum(
                    trans_ref[pl.ds(start, _CHUNK), :, :], start)
            reg_sum = jax.lax.fori_loop(0, n_full, body,
                                        jnp.zeros((1, 1), jnp.float32),
                                        unroll=(n_full <= 8))
            if rem:
                off = n_full * _CHUNK
                reg_sum = reg_sum + fro_masked_sum(
                    trans_ref[pl.ds(off, rem), :, :], off)
        else:
            reg_sum = fro_masked_sum(trans_ref[...], 0)

        out_ref[...] += jnp.float32(scale) * reg_sum - nll_sum

        # --- finalize: mean over the (unpadded) batch ---
        @pl.when(step == pl.num_programs(0) - 1)
        def _():
            out_ref[...] *= jnp.float32(inv_b)

    return kernel


def get_loss(pred, target, trans_feat, mat_diff_loss_scale=MAT_DIFF_LOSS_SCALE,
             *, _tile_b_override=None):
    """pred: (B, C) f32 log-probs; target: (B,) int; trans_feat: (B, K, K) f32."""
    pred = pred.astype(jnp.float32)
    trans_feat = trans_feat.astype(jnp.float32)
    target2d = target.astype(jnp.int32).reshape(-1, 1)

    B, C = pred.shape
    K = trans_feat.shape[-1]

    tile_b, vmem_limit = _pick_tile_and_vmem(B, C, K)
    if _tile_b_override is not None:   # test hook only (must be a multiple of 8 if < B)
        tile_b = int(_tile_b_override)
    needs_mask = (B % tile_b) != 0
    grid = (pl.cdiv(B, tile_b),)

    kernel = _make_kernel(batch=B, num_classes=C, k=K, tile_b=tile_b,
                          scale=float(mat_diff_loss_scale), needs_mask=needs_mask)

    cost = pl.CostEstimate(
        flops=int(B * (2 * K ** 3 + 3 * K ** 2)),
        transcendentals=int(B),
        bytes_accessed=int(B * (K * K + C + 1) * 4 + 4),
    )

    out = pl.pallas_call(
        kernel,
        out_shape=jax.ShapeDtypeStruct((1, 1), jnp.float32),
        grid_spec=pltpu.PrefetchScalarGridSpec(
            num_scalar_prefetch=0,
            grid=grid,
            in_specs=[
                pl.BlockSpec((tile_b, C), lambda i: (i, 0)),
                pl.BlockSpec((tile_b, 1), lambda i: (i, 0)),
                pl.BlockSpec((tile_b, K, K), lambda i: (i, 0, 0)),
            ],
            out_specs=pl.BlockSpec((1, 1), lambda i: (0, 0)),
        ),
        compiler_params=pltpu.CompilerParams(
            dimension_semantics=("arbitrary",),
            vmem_limit_bytes=vmem_limit),
        cost_estimate=cost,
    )(pred, target2d, trans_feat)
    return out[0, 0]


def _reference(pred, target, trans_feat, scale=MAT_DIFF_LOSS_SCALE):
    # Pure-JAX reference for sanity checking (mirrors the PyTorch module).
    B = pred.shape[0]
    K = trans_feat.shape[-1]
    nll = -jnp.mean(pred[jnp.arange(B), target])
    aat = jnp.einsum('bij,bkj->bik', trans_feat, trans_feat)
    diff = aat - jnp.eye(K, dtype=trans_feat.dtype)[None]
    mat = jnp.mean(jnp.sqrt(jnp.sum(diff * diff, axis=(1, 2))))
    return nll + mat * scale


if __name__ == "__main__":
    def _case(B, C, K, tile_override=None):
        key = jax.random.PRNGKey(0)
        k1, k2, k3 = jax.random.split(key, 3)
        logits = jax.random.normal(k1, (B, C), dtype=jnp.float32)
        pred = jax.nn.log_softmax(logits, axis=-1)           # log-probs, like PointNet output
        target = jax.random.randint(k2, (B,), 0, C, dtype=jnp.int32)
        trans_feat = (jax.random.normal(k3, (B, K, K), dtype=jnp.float32) * 0.1
                      + jnp.eye(K, dtype=jnp.float32)[None])
        total = jax.block_until_ready(
            get_loss(pred, target, trans_feat, _tile_b_override=tile_override))
        ref = _reference(pred, target, trans_feat)
        assert jnp.allclose(total, ref, rtol=1e-5, atol=1e-5), (B, C, K, total, ref)

    # Single grid step (typical small case).
    _case(B=8, C=16, K=8)
    # Multi-step grid + ragged last tile (mask path) + short unrolled chunk loop.
    _case(B=40, C=16, K=8, tile_override=16)
    # Rolled chunk loop (n_full > 8) inside a single grid step.
    _case(B=80, C=16, K=8)

    print("KERNEL_OK")
</pallas_src>

<mosaic_0001>
module attributes {stable_mosaic.version = 11 : i64} {
  func.func @kernel(%arg0: i32, %arg1: memref<8x16xf32, #tpu.memory_space<vmem>>, %arg2: memref<8x1xi32, #tpu.memory_space<vmem>>, %arg3: memref<8x8x8xf32, #tpu.memory_space<vmem>>, %arg4: memref<1x1xf32, #tpu.memory_space<vmem>>) attributes {dimension_semantics = [#tpu.dimension_semantics<arbitrary>], iteration_bounds = array<i64: 1>, scalar_prefetch = 0 : i64, scratch_operands = 0 : i64, tpu.core_type = #tpu.core_type<tc>, window_params = [{transform_indices = @transform_0, window_bounds = array<i64: 8, 16>}, {transform_indices = @transform_1, window_bounds = array<i64: 8, 1>}, {transform_indices = @transform_2, window_bounds = array<i64: 8, 8, 8>}, {pipeline_mode = #tpu.pipeline_mode<synchronous>, transform_indices = @transform_3, window_bounds = array<i64: 1, 1>}]} {
    %c0_i32 = arith.constant 0 : i32
    %0 = arith.cmpi eq, %arg0, %c0_i32 : i32
    %1 = arith.extui %0 : i1 to i32
    %c0_i32_0 = arith.constant 0 : i32
    %2 = arith.cmpi ne, %1, %c0_i32_0 : i32
    scf.if %2 {
      %cst_20 = arith.constant 0.000000e+00 : f32
      %46 = vector.broadcast %cst_20 : f32 to vector<1x1xf32>
      %c0_21 = arith.constant 0 : index
      %c0_22 = arith.constant 0 : index
      %47 = vector.load %arg4[%c0_21, %c0_22] : memref<1x1xf32, #tpu.memory_space<vmem>>, vector<1x1xf32>
      tpu.vector_store %arg4[%c0_21, %c0_22], %46 {strides = array<i32>} : memref<1x1xf32, #tpu.memory_space<vmem>>, vector<1x1xf32>,
    } else {
    }
    %c0 = arith.constant 0 : index
    %c0_1 = arith.constant 0 : index
    %3 = vector.load %arg1[%c0, %c0_1] : memref<8x16xf32, #tpu.memory_space<vmem>>, vector<8x16xf32>
    %c0_2 = arith.constant 0 : index
    %c0_3 = arith.constant 0 : index
    %4 = vector.load %arg2[%c0_2, %c0_3] : memref<8x1xi32, #tpu.memory_space<vmem>>, vector<8x1xi32>
    %5 = tpu.iota {dimensions = array<i32: 1>} : vector<8x16xi32>
    %6 = vector.broadcast %4 : vector<8x1xi32> to vector<8x16xi32>
    %7 = arith.cmpi eq, %5, %6 : vector<8x16xi32>
    %cst = arith.constant 0.000000e+00 : f32
    %8 = vector.broadcast %cst : f32 to vector<8x16xf32>
    %9 = arith.select %7, %3, %8 : vector<8x16xi1>, vector<8x16xf32>
    %cst_4 = arith.constant dense<0.000000e+00> : vector<8xf32>
    %10 = vector.multi_reduction <add>, %9, %cst_4 [1] : vector<8x16xf32> to vector<8xf32>
    %11 = vector.shape_cast %10 : vector<8xf32> to vector<8x1xf32>
    %12 = vector.shape_cast %11 : vector<8x1xf32> to vector<1x8x1xf32>
    %cst_5 = arith.constant dense<0.000000e+00> : vector<1xf32>
    %13 = vector.multi_reduction <add>, %12, %cst_5 [1, 2] : vector<1x8x1xf32> to vector<1xf32>
    %14 = vector.shape_cast %13 : vector<1xf32> to vector<1x1x1xf32>
    %15 = vector.extract %14[0, 0, 0] : f32 from vector<1x1x1xf32>
    %16 = vector.broadcast %15 : f32 to vector<1x1xf32>
    %17 = tpu.iota {dimensions = array<i32: 0>} : vector<8x8xi32>
    %18 = tpu.iota {dimensions = array<i32: 1>} : vector<8x8xi32>
    %19 = arith.cmpi eq, %17, %18 : vector<8x8xi32>
    %20 = arith.extui %19 : vector<8x8xi1> to vector<8x8xi32>
    %21 = arith.sitofp %20 : vector<8x8xi32> to vector<8x8xf32>
    %c0_6 = arith.constant 0 : index
    %c0_7 = arith.constant 0 : index
    %c0_8 = arith.constant 0 : index
    %22 = vector.load %arg3[%c0_6, %c0_7, %c0_8] : memref<8x8x8xf32, #tpu.memory_space<vmem>>, vector<8x8x8xf32>
    "tpu.trace_start"() <{level = 10 : i32, message = "bij,bkj->bik"}> : () -> ()
    %cst_9 = arith.constant dense<0.000000e+00> : vector<8x8x8xf32>
    %23 = tpu.matmul %22, %22, %cst_9 {dimension_numbers = #tpu.dot_dimension_numbers<[2], [2], [1], [1], [0, 0, 0, 1, 1, 1], [0], [0]>} : vector<8x8x8xf32>, vector<8x8x8xf32>, vector<8x8x8xf32> -> vector<8x8x8xf32>
    "tpu.trace_stop"() : () -> ()
    %24 = vector.shape_cast %21 : vector<8x8xf32> to vector<1x8x8xf32>
    %25 = vector.broadcast %24 : vector<1x8x8xf32> to vector<8x8x8xf32>
    %26 = arith.subf %23, %25 : vector<8x8x8xf32>
    %27 = arith.mulf %26, %26 : vector<8x8x8xf32>
    %cst_10 = arith.constant dense<0.000000e+00> : vector<8x8xf32>
    %28 = vector.multi_reduction <add>, %27, %cst_10 [2] : vector<8x8x8xf32> to vector<8x8xf32>
    %cst_11 = arith.constant dense<0.000000e+00> : vector<8xf32>
    %29 = vector.multi_reduction <add>, %28, %cst_11 [1] : vector<8x8xf32> to vector<8xf32>
    %30 = vector.shape_cast %29 : vector<8xf32> to vector<8x1xf32>
    %31 = math.sqrt %30 : vector<8x1xf32>
    %32 = vector.shape_cast %31 : vector<8x1xf32> to vector<1x8x1xf32>
    %cst_12 = arith.constant dense<0.000000e+00> : vector<1xf32>
    %33 = vector.multi_reduction <add>, %32, %cst_12 [1, 2] : vector<1x8x1xf32> to vector<1xf32>
    %34 = vector.shape_cast %33 : vector<1xf32> to vector<1x1x1xf32>
    %35 = vector.extract %34[0, 0, 0] : f32 from vector<1x1x1xf32>
    %36 = vector.broadcast %35 : f32 to vector<1x1xf32>
    %c0_13 = arith.constant 0 : index
    %c0_14 = arith.constant 0 : index
    %37 = vector.load %arg4[%c0_13, %c0_14] : memref<1x1xf32, #tpu.memory_space<vmem>>, vector<1x1xf32>
    %cst_15 = arith.constant 1.000000e-03 : f32
    %38 = vector.broadcast %cst_15 : f32 to vector<1x1xf32>
    %39 = arith.mulf %38, %36 : vector<1x1xf32>
    %40 = arith.subf %39, %16 : vector<1x1xf32>
    %41 = arith.addf %37, %40 : vector<1x1xf32>
    %c0_16 = arith.constant 0 : index
    %c0_17 = arith.constant 0 : index
    %42 = vector.load %arg4[%c0_16, %c0_17] : memref<1x1xf32, #tpu.memory_space<vmem>>, vector<1x1xf32>
    tpu.vector_store %arg4[%c0_16, %c0_17], %41 {strides = array<i32>} : memref<1x1xf32, #tpu.memory_space<vmem>>, vector<1x1xf32>,
    %c0_i32_18 = arith.constant 0 : i32
    %43 = arith.cmpi eq, %arg0, %c0_i32_18 : i32
    %44 = arith.extui %43 : i1 to i32
    %c0_i32_19 = arith.constant 0 : i32
    %45 = arith.cmpi ne, %44, %c0_i32_19 : i32
    scf.if %45 {
      %c0_20 = arith.constant 0 : index
      %c0_21 = arith.constant 0 : index
      %46 = vector.load %arg4[%c0_20, %c0_21] : memref<1x1xf32, #tpu.memory_space<vmem>>, vector<1x1xf32>
      %cst_22 = arith.constant 1.250000e-01 : f32
      %47 = vector.broadcast %cst_22 : f32 to vector<1x1xf32>
      %48 = arith.mulf %46, %47 : vector<1x1xf32>
      %c0_23 = arith.constant 0 : index
      %c0_24 = arith.constant 0 : index
      %49 = vector.load %arg4[%c0_23, %c0_24] : memref<1x1xf32, #tpu.memory_space<vmem>>, vector<1x1xf32>
      tpu.vector_store %arg4[%c0_23, %c0_24], %48 {strides = array<i32>} : memref<1x1xf32, #tpu.memory_space<vmem>>, vector<1x1xf32>,
    } else {
    }
    return
  }
  func.func @transform_0(%arg0: i32) -> (i32, i32) {
    %c0_i32 = arith.constant 0 : i32
    %c0_i32_0 = arith.constant 0 : i32
    return %arg0, %c0_i32 : i32, i32
  }
  func.func @transform_1(%arg0: i32) -> (i32, i32) {
    %c0_i32 = arith.constant 0 : i32
    %c0_i32_0 = arith.constant 0 : i32
    return %arg0, %c0_i32 : i32, i32
  }
  func.func @transform_2(%arg0: i32) -> (i32, i32, i32) {
    %c0_i32 = arith.constant 0 : i32
    %c0_i32_0 = arith.constant 0 : i32
    %c0_i32_1 = arith.constant 0 : i32
    return %arg0, %c0_i32, %c0_i32_0 : i32, i32, i32
  }
  func.func @transform_3(%arg0: i32) -> (i32, i32) {
    %c0_i32 = arith.constant 0 : i32
    %c0_i32_0 = arith.constant 0 : i32
    %c0_i32_1 = arith.constant 0 : i32
    return %c0_i32, %c0_i32_0 : i32, i32
  }
}

</mosaic_0001>

<bundles_post_ra>
// kernel: tpu_custom_call.1
= control target key start
LH: loop header
LB: loop body
LE: loop exit
PB: predicated region body
PF: predicated region fallthrough
CT: control target
= control target key end

     0   :  { %8 = vsyncpa [#allocation3], 0  ;;  %s551_s0 = inlined_call_operand.vmem [shape: f32[8,16], index: 0, kind: input, shape index: {}]   ;;  %s552_s1 = inlined_call_operand.vmem [shape: s32[8,1], index: 1, kind: input, shape index: {}]   ;;  %s553_s2 = inlined_call_operand.hbm [shape: f32[8,8,8], index: 2, kind: input, shape index: {}]   ;;  %s554_s3 = inlined_call_operand.hbm [shape: f32[1,1], index: 3, kind: output, shape index: {}]  }
   0x1   :  { %9 = vsyncpa [#allocation4], 0  ;;  %s18_s14 = sshll.u32 %s553_s2, 4  ;;  %s469_s15 = smov [#allocation2]   ;;  %s19_s14 = int_to_ptr.hbm [resolvable:$true] %s18_s14 }
   0x2   :  { %s20_s16 = sshll.u32 %s469_s15, 4  ;;  %s470_s17 = smov 128   ;;  %s21_s16 = int_to_ptr.vmem [resolvable:$true] %s20_s16 }
   0x3   :  { %s471_s18 = smov 8  }
   0x4   :  { %26 = dma.hbm_to_vmem [thread:$0]  %s19_s14, 1024, %s21_s16, [#allocation3], %s470_s17, %s470_s17, %s471_s18  }
   0x5   :  { %465 = dma.done.wait [#allocation3], 1024  }
   0x6   :  { %466 = vsyncadd [#allocation3], 4294966272  ;;  %vm75_vm0 = vcmask 64512   ;;  %v67_v0 = vld [vmem:[#allocation2] sm:$0xff]  ;;  %v69_v1 = vld [vmem:[#allocation2 + $0x10] sm:$0xff]  ;;  %v39_v8 = vlaneseq  ;;  %v472_v11 = vmov 0  }
   0x7   :  { %v71_v2 = vld [vmem:[#allocation2 + $0x20] sm:$0xff]  ;;  %387 = vmatpush.xpose.msk.msra.mxu0 %vm75_vm0, %v67_v0  ;;  %391 = vmatpush.xpose.msk.msra.mxu2 %vm75_vm0, %v69_v1  ;;  %v68_v3 = vld [vmem:[#allocation2 + $0x8] sm:$0xff]  ;;  %v70_v4 = vld [vmem:[#allocation2 + $0x18] sm:$0xff]  ;;  %v473_v12 = vmov 0.0   ;;  %vm316_vm2 = vcmask 1041409   ;;  %vm318_vm3 = vcmask 1042434  }
   0x8   :  { %v73_v5 = vld [vmem:[#allocation2 + $0x30] sm:$0xff]  ;;  %389 = vmatpush.xpose.msk.msra.mxu1 %vm75_vm0, %v68_v3  ;;  %v74_v6 = vld [vmem:[#allocation2 + $0x38] sm:$0xff]  ;;  %393 = vmatpush.xpose.msk.msra.mxu3 %vm75_vm0, %v70_v4  ;;  %v72_v7 = vld [vmem:[#allocation2 + $0x28] sm:$0xff]  ;;  %v514_v9 = vand.u32 127, %v39_v8  ;;  %v63_v10 = vshrl.u32 %v39_v8, 7  ;;  %vm320_vm4 = vcmask 1043459  }
   0x9   :  { %413 = vset.pattern.permute.xlu2 %v472_v11  ;;  %414 = vset.pattern.permute.xlu0 %v472_v11  ;;  %v38_v46 = vld [vmem:[%s552_s1] sm:$0xff]  ;;  %vm322_vm5 = vcmask 1044484   ;;  %vm324_vm6 = vcmask 1045509   ;;  %vm326_vm7 = vcmask 1046534   ;;  %vm328_vm8 = vcmask 1047559   ;;  %s474_s22 = smov [#allocation5]  }
   0xa   :  { %388 = vmatmul.msk.f32.vlgmr.msra.gmra.mxu0 %vm75_vm0, %v67_v0  ;;  %392 = vmatmul.msk.f32.vlgmr.msra.gmra.mxu2 %vm75_vm0, %v69_v1  ;;  %vm64_vm1 = vcmp.eq.s32.totalorder %v63_v10, %v514_v9  ;;  %vm46_vm9 = vcmask 130048   ;;  %vm50_vm11 = vcmask 7168   ;;  %vm35_vm14 = vcmask 0   ;;  %s374_s23 = sshll.u32 %s474_s22, 4  ;;  %s376_s26 = sshll.u32 %s554_s3, 4  ;;  %s375_s23 = int_to_ptr.vmem [resolvable:$true] %s374_s23  ;;  %s377_s26 = int_to_ptr.hbm [resolvable:$true] %s376_s26 }
   0xb   :  { %395 = vmatpush.xpose.msk.msrb.mxu0 %vm75_vm0, %v71_v2  ;;  %399 = vmatpush.xpose.msk.msrb.mxu2 %vm75_vm0, %v73_v5  ;;  %v386_v13 = vsel %vm64_vm1, 1.0, %v473_v12  ;;  %36 = vst.msk [vmem:[#allocation5] sm:$0x1] %vm35_vm14, %v473_v12 }
   0xc   :  { %390 = vmatmul.msk.f32.vlgmr.msra.gmra.mxu1 %vm75_vm0, %v68_v3  ;;  %401 = vmatpush.xpose.msk.msrb.mxu3 %vm75_vm0, %v74_v6 }
   0xd   :  { %394 = vmatmul.msk.f32.vlgmr.msra.gmra.mxu3 %vm75_vm0, %v70_v4  ;;  %397 = vmatpush.xpose.msk.msrb.mxu1 %vm75_vm0, %v72_v7  ;;  %v37_v4 = vld [vmem:[%s551_s0] sm:$0xff] }
  0x12   :  { %396 = vmatmul.msk.f32.vlgmr.msrb.gmra.mxu0 %vm75_vm0, %v71_v2  ;;  %400 = vmatmul.msk.f32.vlgmr.msrb.gmra.mxu2 %vm75_vm0, %v73_v5 }
  0x14   :  { %398 = vmatmul.msk.f32.vlgmr.msrb.gmra.mxu1 %vm75_vm0, %v72_v7 }
  0x15   :  { %402 = vmatmul.msk.f32.vlgmr.msrb.gmra.mxu3 %vm75_vm0, %v74_v6 }
  0x87   :  { %v96_v14 = vpop.f32.mrf.mxu0 }
  0x88   :  { %v260_v15 = vsub.f32 %v96_v14, %v386_v13 }
  0x89   :  { %v119_v16 = vpop.f32.mrf.mxu1 }
  0x8a   :  { %v268_v17 = vmul.f32 %v260_v15, %v260_v15  ;;  %v261_v18 = vsub.f32 %v119_v16, %v386_v13 }
  0x8c   :  { %v276_v19 = vsel %vm75_vm0, %v268_v17, 0.0  ;;  %v269_v22 = vmul.f32 %v261_v18, %v261_v18 }
  0x8d   :  { %v142_v20 = vpop.f32.mrf.mxu2  ;;  %277 = vadd.xlane.f32.xlu0 %v276_v19 }
  0x8e   :  { %v262_v21 = vsub.f32 %v142_v20, %v386_v13  ;;  %v279_v31 = vsel %vm75_vm0, %v269_v22, 0.0 }
  0x8f   :  { %v188_v23 = vpop.f32.mrf.mxu0 }
  0x90   :  { %v165_v24 = vpop.f32.mrf.mxu3  ;;  %v270_v25 = vmul.f32 %v262_v21, %v262_v21  ;;  %v264_v26 = vsub.f32 %v188_v23, %v386_v13 }
  0x91   :  { %v263_v27 = vsub.f32 %v165_v24, %v386_v13  ;;  %v211_v28 = vpop.f32.mrf.mxu1 }
  0x92   :  { %v272_v29 = vmul.f32 %v264_v26, %v264_v26  ;;  %v282_v30 = vsel %vm75_vm0, %v270_v25, 0.0  ;;  %v265_v32 = vsub.f32 %v211_v28, %v386_v13 }
  0x93   :  { %283 = vadd.xlane.f32.xlu1 %v282_v30  ;;  %v271_v33 = vmul.f32 %v263_v27, %v263_v27 }
  0x94   :  { %v288_v34 = vsel %vm75_vm0, %v272_v29, 0.0  ;;  %v273_v36 = vmul.f32 %v265_v32, %v265_v32 }
  0x95   :  { %280 = vadd.xlane.f32.xlu0 %v279_v31  ;;  %289 = vadd.xlane.f32.xlu2 %v288_v34  ;;  %v234_v35 = vpop.f32.mrf.mxu2  ;;  %v285_v40 = vsel %vm75_vm0, %v271_v33, 0.0 }
  0x96   :  { %v266_v37 = vsub.f32 %v234_v35, %v386_v13  ;;  %v291_v42 = vsel %vm75_vm0, %v273_v36, 0.0 }
  0x98   :  { %v257_v38 = vpop.f32.mrf.mxu3  ;;  %v274_v39 = vmul.f32 %v266_v37, %v266_v37 }
  0x99   :  { %v267_v41 = vsub.f32 %v257_v38, %v386_v13 }
  0x9a   :  { %v294_v43 = vsel %vm75_vm0, %v274_v39, 0.0 }
  0x9b   :  { %286 = vadd.xlane.f32.xlu1 %v285_v40  ;;  %v275_v44 = vmul.f32 %v267_v41, %v267_v41 }
  0x9d   :  { %292 = vadd.xlane.f32.xlu2 %v291_v42  ;;  %295 = vadd.xlane.f32.xlu0 %v294_v43  ;;  %v297_v45 = vsel %vm75_vm0, %v275_v44, 0.0  ;;  %v357_v43 = vld [vmem:[#allocation5] sm:$0x1] }
  0xa3   :  { %298 = vadd.xlane.f32.xlu1 %v297_v45 }
  0xb5   :  { %42 = vperm.xlu2 %413, %v38_v46  }
 0x100   :  { %v278_v47 = vpop.xlane.xlu0 %277 }
 0x101   :  { %v308_v52 = vperm.slane %v278_v47, %v514_v9 }
 0x106   :  { %v284_v48 = vpop.xlane.xlu1 %283 }
 0x107   :  { %v310_v54 = vperm.slane %v284_v48, %v514_v9 }
 0x108   :  { %v281_v49 = vpop.xlane.xlu0 %280  ;;  %v290_v50 = vpop.xlane.xlu2 %289 }
 0x109   :  { %v309_v51 = vperm.slane %v281_v49, %v514_v9  ;;  %v312_v57 = vperm.slane %v290_v50, %v514_v9 }
 0x10b   :  { %v317_v53 = vsel %vm316_vm2, %v309_v51, %v308_v52 }
 0x10c   :  { %v319_v58 = vsel %vm318_vm3, %v310_v54, %v317_v53 }
 0x10e   :  { %v287_v55 = vpop.xlane.xlu1 %286 }
 0x10f   :  { %v311_v56 = vperm.slane %v287_v55, %v514_v9 }
 0x110   :  { %v293_v59 = vpop.xlane.xlu2 %292  ;;  %v296_v62 = vpop.xlane.xlu0 %295 }
 0x111   :  { %v321_v60 = vsel %vm320_vm4, %v311_v56, %v319_v58  ;;  %v313_v61 = vperm.slane %v293_v59, %v514_v9  ;;  %v314_v0 = vperm.slane %v296_v62, %v514_v9 }
 0x112   :  { %v323_v63 = vsel %vm322_vm5, %v312_v57, %v321_v60 }
 0x113   :  { %v325_v1 = vsel %vm324_vm6, %v313_v61, %v323_v63 }
 0x114   :  { %v327_v5 = vsel %vm326_vm7, %v314_v0, %v325_v1 }
 0x116   :  { %v299_v2 = vpop.xlane.xlu1 %298 }
 0x117   :  { %v315_v3 = vperm.slane %v299_v2, %v514_v9 }
 0x118   :  { %v43_v6 = vpop.permute.xlu2 %42 }
 0x119   :  { %v329_v7 = vsel %vm328_vm8, %v315_v3, %v327_v5  ;;  %vm44_vm10 = vcmp.eq.s32.totalorder %v514_v9, %v43_v6 }
 0x11a   :  { %v331_v8 = vsel %vm75_vm0, %v329_v7, 0.0  ;;  %v45_v10 = vsel %vm44_vm10, %v37_v4, 0.0 }
 0x11b   :  { %332 = vadd.xlane.f32.xlu0 %v331_v8  ;;  %v47_v11 = vsel %vm46_vm9, %v45_v10, 0.0 }
 0x11c   :  { %48 = vadd.xlane.f32.xlu1 %v47_v11 }
 0x18e   :  { %v333_v13 = vpop.xlane.xlu0 %332 }
 0x18f   :  { %415 = vrsqrt.f32 %v333_v13  ;;  %v49_v14 = vpop.xlane.xlu1 %48  ;;  %vm341_vm12 = vcmp.eq.f32.partialorder %v333_v13, inf  ;;  %v344_v22 = vand.u32 2147483648, %v333_v13  ;;  %vm343_vm13 = vcmp.eq.f32.partialorder %v333_v13, 0.0 }
 0x190   :  { %v51_v15 = vsel %vm50_vm11, %v49_v14, 0.0 }
 0x191   :  { %52 = vadd.xlane.f32.xlu0 %v51_v15 }
 0x195   :  { %v416_v16 = vpop.eup %415 }
 0x196   :  { %v335_v17 = vmul.f32 %v416_v16, %v333_v13 }
 0x198   :  { %v336_v18 = vmul.f32 %v416_v16, %v335_v17 }
 0x19a   :  { %v337_v19 = vmul.f32 0.5, %v336_v18 }
 0x19c   :  { %v338_v20 = vsub.f32 1.5, %v337_v19 }
 0x19e   :  { %v339_v21 = vmul.f32 %v416_v16, %v338_v20 }
 0x1a0   :  { %v340_v9 = vmul.f32 %v339_v21, %v333_v13 }
 0x1a2   :  { %v342_v23 = vsel %vm341_vm12, %v333_v13, %v340_v9 }
 0x1a3   :  { %v345_v24 = vsel %vm343_vm13, %v344_v22, %v342_v23 }
 0x1a4   :  { %v346_v25 = vsel %vm50_vm11, %v345_v24, 0.0 }
 0x1a5   :  { %347 = vadd.xlane.f32.xlu1 %v346_v25 }
 0x204   :  { %v53_v26 = vpop.xlane.xlu0 %52 }
 0x205   :  { %v54_v27 = vrot.slane %v53_v26, 4 }
 0x207   :  { %v55_v28 = vadd.f32 %v54_v27, %v53_v26 }
 0x209   :  { %v56_v29 = vrot.slane %v55_v28, 2 }
 0x20b   :  { %v57_v30 = vadd.f32 %v56_v29, %v55_v28 }
 0x20d   :  { %v58_v31 = vrot.slane %v57_v30, 1 }
 0x20f   :  { %v59_v32 = vadd.f32 %v58_v31, %v57_v30 }
 0x211   :  { %403 = vpush %v59_v32 }
 0x218   :  { %v348_v33 = vpop.xlane.xlu1 %347 }
 0x219   :  { %v349_v34 = vrot.slane %v348_v33, 4 }
 0x21b   :  { %v350_v35 = vadd.f32 %v349_v34, %v348_v33 }
 0x21d   :  { %v351_v36 = vrot.slane %v350_v35, 2 }
 0x21f   :  { %v352_v37 = vadd.f32 %v351_v36, %v350_v35 }
 0x221   :  { %v353_v38 = vrot.slane %v352_v37, 1 }
 0x223   :  { %v354_v39 = vadd.f32 %v353_v38, %v352_v37 }
 0x225   :  { %405 = vpush %v354_v39 }
 0x242   :  { %s404_s0 = spop %403 }
 0x243   :  { %v61_v42 = vstv %s404_s0 }
 0x256   :  { %s406_s21 = spop %405 }
 0x257   :  { %v356_v40 = vstv %s406_s21 }
 0x258   :  { %v358_v41 = vmul.f32 0.001, %v356_v40 }
 0x25a   :  { %v359_v44 = vsub.f32 %v358_v41, %v61_v42 }
 0x25c   :  { %v360_v45 = vadd.f32 %v359_v44, %v357_v43 }
 0x25e   :  { %362 = vst.msk [vmem:[#allocation5] sm:$0x1] %vm35_vm14, %v360_v45 }
 0x265   :  { %v366_v46 = vld [vmem:[#allocation5] sm:$0x1] }
 0x266   :  { %v367_v47 = vmul.f32 0.125, %v366_v46 }
 0x268   :  { %368 = vst.msk [vmem:[#allocation5] sm:$0x1] %vm35_vm14, %v367_v47 }
 0x269   :  { %379 = dma.vmem_to_hbm [thread:$0]  %s375_s23, 16, %s377_s26, [#allocation4]  }
 0x26a   :  { %467 = dma.done.wait [#allocation4], 16  }
 0x26b   :  { %468 = vsyncadd [#allocation4], 4294967280 }
 0x26c   :  { %384 = vsyncpa [#allocation3], 1 }
 0x26d   :  { %385 = vsyncpa [#allocation4], 1 }

</bundles_post_ra>
